<compile_context>
chip_gen: v7x
topology: tpu7x:2x2x1
jax: 0.10.0
libtpu: 0.0.40
codegen_flags: <defaults>
</compile_context>

<pallas_src>
import functools

import jax
import jax.numpy as jnp
from jax.experimental import pallas as pl
from jax.experimental.pallas import tpu as pltpu

HIDDEN = 256
OUT_PAD = 128  # pad the action head to one full lane tile for a dense store


# --------------------------------------------------------------------------
# Kernel
# --------------------------------------------------------------------------
def _actor_kernel(max_action,
                  state_ref, task_ref, w1_ref, wt_ref, w23_ref, w4_ref,
                  bias_ref, out_ref):
    f32 = jnp.float32
    bf16 = jnp.bfloat16

    state = state_ref[...].astype(bf16)          # (B, state_dim)
    task = task_ref[...].astype(bf16)            # (1, task_dim)

    # task branch: leaky_relu(task_lin_layer(task_repr_vec))
    t = jnp.dot(task, wt_ref[...], preferred_element_type=f32) + bias_ref[1:2, :]
    task_repr = jnp.maximum(t, 0.01 * t)         # (1, 256)

    # a = relu(l1(state))
    a = jnp.dot(state, w1_ref[...], preferred_element_type=f32) + bias_ref[0:1, :]
    a = jnp.maximum(a, 0.0)                      # (B, 256)

    # a = relu(l2(a))
    a = jnp.dot(a.astype(bf16), w23_ref[0], preferred_element_type=f32) + bias_ref[2:3, :]
    a = jnp.maximum(a, 0.0)

    # a = task_repr * a   (broadcast over batch rows)
    a = task_repr * a

    # a = relu(l3(a))
    a = jnp.dot(a.astype(bf16), w23_ref[1], preferred_element_type=f32) + bias_ref[3:4, :]
    a = jnp.maximum(a, 0.0)

    # max_action * tanh(l4(a))  — l4 padded to 128 lanes for a dense store
    o = jnp.dot(a.astype(bf16), w4_ref[...], preferred_element_type=f32) + bias_ref[4:5, :OUT_PAD]
    out_ref[...] = (max_action * jnp.tanh(o)).astype(out_ref.dtype)


# --------------------------------------------------------------------------
# Param packing (done ONCE per parameter set, not per forward call)
# --------------------------------------------------------------------------
def pack_params(params, action_dim):
    bf16 = jnp.bfloat16
    f32 = jnp.float32

    w1 = params["w1"].astype(bf16)                                  # (S, 256)
    wt = params["wt"].astype(bf16)                                  # (T, 256)

    # w2 and w3 packed into one (2, 256, 256) bf16 operand
    w23 = jnp.stack([params["w2"], params["w3"]], axis=0).astype(bf16)

    # Action head padded to a full lane tile: (256, 128) bf16
    w4 = jnp.zeros((HIDDEN, OUT_PAD), f32).at[:, :action_dim].set(params["w4"]).astype(bf16)

    def row(b):
        r = jnp.zeros((1, HIDDEN), f32)
        return r.at[:, :b.shape[-1]].set(b)

    # All biases in one (5, 256) f32 operand: [b1, bt, b2, b3, b4(padded)]
    biases = jnp.concatenate(
        [row(params["b1"]), row(params["bt"]), row(params["b2"]),
         row(params["b3"]), row(params["b4"])], axis=0)

    return dict(w1=w1, wt=wt, w23=w23, w4=w4, biases=biases)


# --------------------------------------------------------------------------
# Forward wrapper
# --------------------------------------------------------------------------
def actor_forward(state, task_repr_vec, packed, max_action, action_dim):
    """state: (B, state_dim) f32, task_repr_vec: (1, task_dim) f32."""
    B = state.shape[0]
    vmem = pl.BlockSpec(memory_space=pltpu.MemorySpace.VMEM)

    out = pl.pallas_call(
        functools.partial(_actor_kernel, float(max_action)),
        out_shape=jax.ShapeDtypeStruct((B, OUT_PAD), jnp.float32),
        in_specs=[vmem] * 7,
        out_specs=vmem,
    )(state, task_repr_vec, packed["w1"], packed["wt"],
      packed["w23"], packed["w4"], packed["biases"])

    return out[:, :action_dim]


# --------------------------------------------------------------------------
# Init (PyTorch nn.Linear-style), reference, and test
# --------------------------------------------------------------------------
def init_params(key, task_dim, state_dim, action_dim, hidden=HIDDEN):
    def linear(k, fan_in, fan_out):
        kw, kb = jax.random.split(k)
        bound = 1.0 / jnp.sqrt(float(fan_in))
        w = jax.random.uniform(kw, (fan_in, fan_out), jnp.float32, -bound, bound)  # stored (in, out)
        b = jax.random.uniform(kb, (1, fan_out), jnp.float32, -bound, bound)
        return w, b

    ks = jax.random.split(key, 5)
    wt, bt = linear(ks[0], task_dim, hidden)
    w1, b1 = linear(ks[1], state_dim, hidden)
    w2, b2 = linear(ks[2], hidden, hidden)
    w3, b3 = linear(ks[3], hidden, hidden)
    w4, b4 = linear(ks[4], hidden, action_dim)
    return dict(wt=wt, bt=bt, w1=w1, b1=b1, w2=w2, b2=b2,
                w3=w3, b3=b3, w4=w4, b4=b4)


def _reference_forward(state, task_repr_vec, p, max_action):
    """Plain-JAX f32 reference mirroring the PyTorch forward."""
    t = task_repr_vec @ p["wt"] + p["bt"]
    task_repr = jnp.where(t > 0, t, 0.01 * t)
    a = jnp.maximum(state @ p["w1"] + p["b1"], 0.0)
    a = jnp.maximum(a @ p["w2"] + p["b2"], 0.0)
    a = task_repr * a
    a = jnp.maximum(a @ p["w3"] + p["b3"], 0.0)
    return max_action * jnp.tanh(a @ p["w4"] + p["b4"])


if __name__ == "__main__":
    B = 2
    STATE_DIM = 17
    ACTION_DIM = 6
    TASK_DIM = 8
    MAX_ACTION = 1.0

    key = jax.random.PRNGKey(0)
    k_params, k_state, k_task = jax.random.split(key, 3)

    params = init_params(k_params, TASK_DIM, STATE_DIM, ACTION_DIM)
    state = jax.random.normal(k_state, (B, STATE_DIM), jnp.float32)
    task_repr_vec = jax.random.normal(k_task, (1, TASK_DIM), jnp.float32)

    packed = pack_params(params, ACTION_DIM)

    fwd = jax.jit(actor_forward, static_argnums=(3, 4))
    out = fwd(state, task_repr_vec, packed, MAX_ACTION, ACTION_DIM)
    out = jax.block_until_ready(out)

    ref = _reference_forward(state, task_repr_vec, params, MAX_ACTION)
    assert out.shape == (B, ACTION_DIM)
    # bf16 weights/activations (f32 accumulation) vs a pure-f32 reference:
    # output is bounded in [-1, 1], so an absolute tolerance of 5e-2 is ample.
    assert jnp.allclose(out, ref, atol=5e-2, rtol=5e-2), "mismatch vs reference"

    print("KERNEL_OK")
</pallas_src>

<mosaic_0001>
module attributes {stable_mosaic.version = 11 : i64} {
  func.func @_actor_kernel(%arg0: memref<2x17xf32, #tpu.memory_space<vmem>>, %arg1: memref<1x8xf32, #tpu.memory_space<vmem>>, %arg2: memref<17x256xbf16, #tpu.memory_space<vmem>>, %arg3: memref<8x256xbf16, #tpu.memory_space<vmem>>, %arg4: memref<2x256x256xbf16, #tpu.memory_space<vmem>>, %arg5: memref<256x128xbf16, #tpu.memory_space<vmem>>, %arg6: memref<5x256xf32, #tpu.memory_space<vmem>>, %arg7: memref<2x128xf32, #tpu.memory_space<vmem>>) attributes {dimension_semantics = [], scalar_prefetch = 0 : i64, scratch_operands = 0 : i64, tpu.core_type = #tpu.core_type<tc>} {
    %c0 = arith.constant 0 : index
    %c0_0 = arith.constant 0 : index
    %0 = vector.load %arg0[%c0, %c0_0] : memref<2x17xf32, #tpu.memory_space<vmem>>, vector<2x17xf32>
    %1 = arith.truncf %0 : vector<2x17xf32> to vector<2x17xbf16>
    %c0_1 = arith.constant 0 : index
    %c0_2 = arith.constant 0 : index
    %2 = vector.load %arg1[%c0_1, %c0_2] : memref<1x8xf32, #tpu.memory_space<vmem>>, vector<1x8xf32>
    %3 = arith.truncf %2 : vector<1x8xf32> to vector<1x8xbf16>
    %c0_3 = arith.constant 0 : index
    %c0_4 = arith.constant 0 : index
    %4 = vector.load %arg3[%c0_3, %c0_4] : memref<8x256xbf16, #tpu.memory_space<vmem>>, vector<8x256xbf16>
    %cst = arith.constant dense<0.000000e+00> : vector<1x256xf32>
    %5 = tpu.matmul %3, %4, %cst {dimension_numbers = #tpu.dot_dimension_numbers<[1], [0], [0], [1], [0, 0, 1, 1], [], []>} : vector<1x8xbf16>, vector<8x256xbf16>, vector<1x256xf32> -> vector<1x256xf32>
    %c1 = arith.constant 1 : index
    %c0_5 = arith.constant 0 : index
    %6 = vector.load %arg6[%c1, %c0_5] : memref<5x256xf32, #tpu.memory_space<vmem>>, vector<1x256xf32>
    %7 = arith.addf %5, %6 : vector<1x256xf32>
    %cst_6 = arith.constant 0.00999999977 : f32
    %8 = vector.broadcast %cst_6 : f32 to vector<1x256xf32>
    %9 = arith.mulf %8, %7 : vector<1x256xf32>
    %10 = arith.maximumf %7, %9 : vector<1x256xf32>
    %c0_7 = arith.constant 0 : index
    %c0_8 = arith.constant 0 : index
    %11 = vector.load %arg2[%c0_7, %c0_8] : memref<17x256xbf16, #tpu.memory_space<vmem>>, vector<17x256xbf16>
    %cst_9 = arith.constant dense<0.000000e+00> : vector<2x256xf32>
    %12 = tpu.matmul %1, %11, %cst_9 {dimension_numbers = #tpu.dot_dimension_numbers<[1], [0], [0], [1], [0, 0, 1, 1], [], []>} : vector<2x17xbf16>, vector<17x256xbf16>, vector<2x256xf32> -> vector<2x256xf32>
    %c0_10 = arith.constant 0 : index
    %c0_11 = arith.constant 0 : index
    %13 = vector.load %arg6[%c0_10, %c0_11] : memref<5x256xf32, #tpu.memory_space<vmem>>, vector<1x256xf32>
    %14 = vector.broadcast %13 : vector<1x256xf32> to vector<2x256xf32>
    %15 = arith.addf %12, %14 : vector<2x256xf32>
    %cst_12 = arith.constant 0.000000e+00 : f32
    %16 = vector.broadcast %cst_12 : f32 to vector<2x256xf32>
    %17 = arith.maximumf %15, %16 : vector<2x256xf32>
    %18 = arith.truncf %17 : vector<2x256xf32> to vector<2x256xbf16>
    %c0_13 = arith.constant 0 : index
    %c0_14 = arith.constant 0 : index
    %c0_15 = arith.constant 0 : index
    %19 = vector.load %arg4[%c0_13, %c0_14, %c0_15] : memref<2x256x256xbf16, #tpu.memory_space<vmem>>, vector<1x256x256xbf16>
    %20 = vector.shape_cast %19 : vector<1x256x256xbf16> to vector<256x256xbf16>
    %cst_16 = arith.constant dense<0.000000e+00> : vector<2x256xf32>
    %21 = tpu.matmul %18, %20, %cst_16 {dimension_numbers = #tpu.dot_dimension_numbers<[1], [0], [0], [1], [0, 0, 1, 1], [], []>} : vector<2x256xbf16>, vector<256x256xbf16>, vector<2x256xf32> -> vector<2x256xf32>
    %c2 = arith.constant 2 : index
    %c0_17 = arith.constant 0 : index
    %22 = vector.load %arg6[%c2, %c0_17] : memref<5x256xf32, #tpu.memory_space<vmem>>, vector<1x256xf32>
    %23 = vector.broadcast %22 : vector<1x256xf32> to vector<2x256xf32>
    %24 = arith.addf %21, %23 : vector<2x256xf32>
    %cst_18 = arith.constant 0.000000e+00 : f32
    %25 = vector.broadcast %cst_18 : f32 to vector<2x256xf32>
    %26 = arith.maximumf %24, %25 : vector<2x256xf32>
    %27 = vector.broadcast %10 : vector<1x256xf32> to vector<2x256xf32>
    %28 = arith.mulf %27, %26 : vector<2x256xf32>
    %29 = arith.truncf %28 : vector<2x256xf32> to vector<2x256xbf16>
    %c1_19 = arith.constant 1 : index
    %c0_20 = arith.constant 0 : index
    %c0_21 = arith.constant 0 : index
    %30 = vector.load %arg4[%c1_19, %c0_20, %c0_21] : memref<2x256x256xbf16, #tpu.memory_space<vmem>>, vector<1x256x256xbf16>
    %31 = vector.shape_cast %30 : vector<1x256x256xbf16> to vector<256x256xbf16>
    %cst_22 = arith.constant dense<0.000000e+00> : vector<2x256xf32>
    %32 = tpu.matmul %29, %31, %cst_22 {dimension_numbers = #tpu.dot_dimension_numbers<[1], [0], [0], [1], [0, 0, 1, 1], [], []>} : vector<2x256xbf16>, vector<256x256xbf16>, vector<2x256xf32> -> vector<2x256xf32>
    %c3 = arith.constant 3 : index
    %c0_23 = arith.constant 0 : index
    %33 = vector.load %arg6[%c3, %c0_23] : memref<5x256xf32, #tpu.memory_space<vmem>>, vector<1x256xf32>
    %34 = vector.broadcast %33 : vector<1x256xf32> to vector<2x256xf32>
    %35 = arith.addf %32, %34 : vector<2x256xf32>
    %cst_24 = arith.constant 0.000000e+00 : f32
    %36 = vector.broadcast %cst_24 : f32 to vector<2x256xf32>
    %37 = arith.maximumf %35, %36 : vector<2x256xf32>
    %38 = arith.truncf %37 : vector<2x256xf32> to vector<2x256xbf16>
    %c0_25 = arith.constant 0 : index
    %c0_26 = arith.constant 0 : index
    %39 = vector.load %arg5[%c0_25, %c0_26] : memref<256x128xbf16, #tpu.memory_space<vmem>>, vector<256x128xbf16>
    %cst_27 = arith.constant dense<0.000000e+00> : vector<2x128xf32>
    %40 = tpu.matmul %38, %39, %cst_27 {dimension_numbers = #tpu.dot_dimension_numbers<[1], [0], [0], [1], [0, 0, 1, 1], [], []>} : vector<2x256xbf16>, vector<256x128xbf16>, vector<2x128xf32> -> vector<2x128xf32>
    %c4 = arith.constant 4 : index
    %c0_28 = arith.constant 0 : index
    %41 = vector.load %arg6[%c4, %c0_28] : memref<5x256xf32, #tpu.memory_space<vmem>>, vector<1x128xf32>
    %42 = vector.broadcast %41 : vector<1x128xf32> to vector<2x128xf32>
    %43 = arith.addf %40, %42 : vector<2x128xf32>
    %44 = math.tanh %43 : vector<2x128xf32>
    %cst_29 = arith.constant 1.000000e+00 : f32
    %45 = vector.broadcast %cst_29 : f32 to vector<2x128xf32>
    %46 = arith.mulf %45, %44 : vector<2x128xf32>
    %c0_30 = arith.constant 0 : index
    %c0_31 = arith.constant 0 : index
    %47 = vector.load %arg7[%c0_30, %c0_31] : memref<2x128xf32, #tpu.memory_space<vmem>>, vector<2x128xf32>
    tpu.vector_store %arg7[%c0_30, %c0_31], %46 {strides = array<i32>} : memref<2x128xf32, #tpu.memory_space<vmem>>, vector<2x128xf32>,
    return
  }
}

</mosaic_0001>

<bundles_post_ra>
// kernel: actor_forward.1
= control target key start
LH: loop header
LB: loop body
LE: loop exit
PB: predicated region body
PF: predicated region fallthrough
CT: control target
= control target key end

     0   :  { %12 = vsyncpa [#allocation3], 0  ;;  %s1497_s0 = inlined_call_operand.hbm [shape: f32[2,17], index: 0, kind: input, shape index: {}]   ;;  %s1498_s1 = inlined_call_operand.vmem [shape: f32[1,8], index: 1, kind: input, shape index: {}]   ;;  %s1499_s2 = inlined_call_operand.hbm [shape: bf16[17,256], index: 2, kind: input, shape index: {}]   ;;  %s1500_s3 = inlined_call_operand.vmem [shape: bf16[8,256], index: 3, kind: input, shape index: {}]   ;;  %s1501_s4 = inlined_call_operand.hbm [shape: bf16[2,256,256], index: 4, kind: input, shape index: {}]   ;;  %s1502_s5 = inlined_call_operand.hbm [shape: bf16[256,128], index: 5, kind: input, shape index: {}]   ;;  %s1503_s6 = inlined_call_operand.hbm [shape: f32[5,256], index: 6, kind: input, shape index: {}]   ;;  %s1504_s7 = inlined_call_operand.hbm [shape: f32[2,128], index: 7, kind: output, shape index: {}]  }
   0x1   :  { %13 = vsyncpa [#allocation6], 0 }
   0x2   :  { %14 = vsyncpa [#allocation9], 0 }
   0x3   :  { %15 = vsyncpa [#allocation4], 0  ;;  %s1341_s24 = smov [#allocation5]   ;;  %s1201_s28 = scalar_lea.hbm %s1499_s2, 384 }
   0x4   :  { %s33_s25 = sshll.u32 %s1341_s24, 4  ;;  %p1202_p0 = scmp.ne.s32.totalorder %s1499_s2, %s1201_s28  ;;  %s34_s25 = int_to_ptr.vmem [resolvable:$true] %s33_s25 }
   0x5   :  { %p1205_p1 = scmp.lt.u32.totalorder %s1201_s28, %s1499_s2 }
   0x7   :  { %p1207_p2 = pnand %p1205_p1, %p1202_p0 }
   0x9   :  { %1210 = shalt.err (!%p1207_p2)
}
   0xa   :  { %s1211_s10 = scalar_lea.vmem %s34_s25, 384  ;;  %p1216_p4 = scmp.lt.s32.totalorder %s34_s25, %s34_s25 }
   0xb   :  { %p1212_p3 = scmp.ne.s32.totalorder %s34_s25, %s1211_s10  ;;  %p1217_p5 = scmp.lt.s32.totalorder %s1211_s10, %s1211_s10 }
   0xd   :  { %p1218_p6 = por %p1217_p5, %p1216_p4 }
   0xf   :  { %p1219_p7 = pnand %p1218_p6, %p1212_p3 }
  0x11   :  { %1222 = shalt.err (!%p1219_p7)
}
  0x12   :  { %s1342_s11 = smov 128   ;;  %s1343_s12 = smov 8  }
  0x13   :  { %39 = dma.hbm_to_vmem [thread:$0]  %s1499_s2, 384, %s34_s25, [#allocation6], %s1342_s11, %s1342_s11, %s1343_s12  }
  0x14   :  { %s1344_s15 = smov [#allocation8]   ;;  %s1223_s19 = scalar_lea.hbm %s1502_s5, 2048 }
  0x15   :  { %s59_s16 = sshll.u32 %s1344_s15, 4  ;;  %p1224_p8 = scmp.ne.s32.totalorder %s1502_s5, %s1223_s19  ;;  %s60_s16 = int_to_ptr.vmem [resolvable:$true] %s59_s16 }
  0x16   :  { %p1227_p9 = scmp.lt.u32.totalorder %s1223_s19, %s1502_s5 }
  0x18   :  { %p1229_p10 = pnand %p1227_p9, %p1224_p8 }
  0x1a   :  { %1232 = shalt.err (!%p1229_p10)
}
  0x1b   :  { %s1233_s24 = scalar_lea.vmem %s60_s16, 2048  ;;  %p1238_p12 = scmp.lt.s32.totalorder %s60_s16, %s60_s16 }
  0x1c   :  { %p1234_p11 = scmp.ne.s32.totalorder %s60_s16, %s1233_s24  ;;  %p1239_p13 = scmp.lt.s32.totalorder %s1233_s24, %s1233_s24 }
  0x1e   :  { %p1240_p0 = por %p1239_p13, %p1238_p12 }
  0x20   :  { %p1241_p1 = pnand %p1240_p0, %p1234_p11 }
  0x22   :  { %1244 = shalt.err (!%p1241_p1)
}
  0x23   :  { %s1345_s2 = smov 64   ;;  %s1346_s25 = smov 4  }
  0x24   :  { %65 = dma.hbm_to_vmem [thread:$0]  %s1502_s5, 2048, %s60_s16, [#allocation9], %s1345_s2, %s1345_s2, %s1346_s25  }
  0x25   :  { %s1347_s28 = smov [#allocation2]   ;;  %s1348_s30 = smov [#allocation7]  }
  0x26   :  { %s22_s29 = sshll.u32 %s1347_s28, 4  ;;  %s47_s8 = sshll.u32 %s1348_s30, 4  ;;  %s23_s29 = int_to_ptr.vmem [resolvable:$true] %s22_s29  ;;  %s1419_s8 = int_to_ptr.vmem [resolvable:$true] %s47_s8 }
  0x27   :  { %s1245_s13 = scalar_lea.hbm %s1497_s0, 32 }
  0x28   :  { %p1246_p2 = scmp.ne.s32.totalorder %s1497_s0, %s1245_s13  ;;  %p1249_p3 = scmp.lt.u32.totalorder %s1245_s13, %s1497_s0 }
  0x2a   :  { %p1251_p4 = pnand %p1249_p3, %p1246_p2 }
  0x2c   :  { %1254 = shalt.err (!%p1251_p4)
}
  0x2d   :  { %s1255_s5 = scalar_lea.vmem %s23_s29, 32  ;;  %p1260_p6 = scmp.lt.s32.totalorder %s23_s29, %s23_s29 }
  0x2e   :  { %p1256_p5 = scmp.ne.s32.totalorder %s23_s29, %s1255_s5  ;;  %p1261_p7 = scmp.lt.s32.totalorder %s1255_s5, %s1255_s5 }
  0x30   :  { %p1262_p8 = por %p1261_p7, %p1260_p6 }
  0x32   :  { %p1263_p9 = pnand %p1262_p8, %p1256_p5 }
  0x34   :  { %1266 = shalt.err (!%p1263_p9)
}
  0x35   :  { %25 = dma.hbm_to_vmem [thread:$0]  %s1497_s0, 32, %s23_s29, [#allocation3]  }
  0x36   :  { %s1267_s22 = scalar_lea.hbm %s1501_s4, 8192 }
  0x37   :  { %p1268_p10 = scmp.ne.s32.totalorder %s1501_s4, %s1267_s22  ;;  %p1271_p11 = scmp.lt.u32.totalorder %s1267_s22, %s1501_s4 }
  0x39   :  { %p1273_p12 = pnand %p1271_p11, %p1268_p10 }
  0x3b   :  { %1276 = shalt.err (!%p1273_p12)
}
  0x3c   :  { %s1277_s26 = scalar_lea.vmem %s1419_s8, 8192  ;;  %p1282_p0 = scmp.lt.s32.totalorder %s1419_s8, %s1419_s8 }
  0x3d   :  { %p1278_p13 = scmp.ne.s32.totalorder %s1419_s8, %s1277_s26  ;;  %p1283_p1 = scmp.lt.s32.totalorder %s1277_s26, %s1277_s26 }
  0x3f   :  { %p1284_p2 = por %p1283_p1, %p1282_p0 }
  0x41   :  { %p1285_p3 = pnand %p1284_p2, %p1278_p13 }
  0x43   :  { %1288 = shalt.err (!%p1285_p3)
}
  0x44   :  { %53 = dma.hbm_to_vmem [thread:$0]  %s1501_s4, 8192, %s1419_s8, [#allocation6], %s1342_s11, %s1342_s11, %s1343_s12  }
  0x45   :  { %s1349_s28 = smov [#allocation10]   ;;  %s1289_s10 = scalar_lea.hbm %s1503_s6, 256 }
  0x46   :  { %s72_s29 = sshll.u32 %s1349_s28, 4  ;;  %p1290_p4 = scmp.ne.s32.totalorder %s1503_s6, %s1289_s10  ;;  %s73_s29 = int_to_ptr.vmem [resolvable:$true] %s72_s29 }
  0x47   :  { %p1293_p5 = scmp.lt.u32.totalorder %s1289_s10, %s1503_s6 }
  0x49   :  { %p1295_p6 = pnand %p1293_p5, %p1290_p4 }
  0x4b   :  { %1298 = shalt.err (!%p1295_p6)
}
  0x4c   :  { %s1299_s18 = scalar_lea.vmem %s73_s29, 256  ;;  %p1304_p8 = scmp.lt.s32.totalorder %s73_s29, %s73_s29 }
  0x4d   :  { %p1300_p7 = scmp.ne.s32.totalorder %s73_s29, %s1299_s18  ;;  %p1305_p9 = scmp.lt.s32.totalorder %s1299_s18, %s1299_s18 }
  0x4f   :  { %p1306_p10 = por %p1305_p9, %p1304_p8 }
  0x51   :  { %p1307_p11 = pnand %p1306_p10, %p1300_p7 }
  0x53   :  { %1310 = shalt.err (!%p1307_p11)
}
  0x54   :  { %75 = dma.hbm_to_vmem [thread:$0]  %s1503_s6, 256, %s73_s29, [#allocation9]  }
  0x55   :  { %1333 = dma.done.wait [#allocation3], 32  }
  0x56   :  { %1334 = vsyncadd [#allocation3], 4294967264 }
  0x57   :  { %1335 = dma.done.wait [#allocation6], 8576  }
  0x58   :  { %1336 = vsyncadd [#allocation6], 4294958720 }
  0x59   :  { %1337 = dma.done.wait [#allocation9], 2304  }
  0x5a   :  { %1338 = vsyncadd [#allocation9], 4294964992  ;;  %v1350_v0 = vmov 0   ;;  %vm205_vm0 = vcmask 1040384   ;;  %v96_v1 = vld [vmem:[%s1500_s3] sm:$0xff]  ;;  %vm119_vm1 = vcmask 1043456  }
  0x5b   :  { %158 = vmatprep.mubr.bf16.mxu1 %v1350_v0  ;;  %v173_v2 = vld [vmem:[#allocation5 + $0x10] sm:$0x11]  ;;  %v94_v3 = vld [vmem:[%s1498_s1] sm:$0x1]  ;;  %v959_v4 = vcombine.high %v96_v1, %v96_v1  ;;  %v958_v5 = vcombine.low %v96_v1, %v96_v1  ;;  %v207_v6 = vsel %vm205_vm0, 65535, %v1350_v0  ;;  %vm115_vm2 = vcmask 64512  }
  0x5c   :  { %v1083_v7 = vld [vmem:[#allocation5] ss:$8 sps:$4 sm:$0xff]   ;;  %v1085_v8 = vld [vmem:[#allocation5 + $0x4] ss:$8 sps:$4 sm:$0xff]   ;;  %v965_v9 = vcombine.high %v173_v2, %v173_v2  ;;  %v95_v11 = vpack.c.bf16 %v94_v3, %v94_v3  ;;  %v964_v14 = vcombine.low %v173_v2, %v173_v2  ;;  %v92_v20 = vld [vmem:[#allocation2] sm:$0x3] }
  0x5d   :  { %960 = vmatprep.subr.msk.bf16.mxu1 %vm119_vm1, %v959_v4  ;;  %v121_v10 = vsel %vm119_vm1, %v958_v5, 0  ;;  %v1087_v12 = vld [vmem:[#allocation7 + $0x4] ss:$8 sps:$4 sm:$0xff]   ;;  %v1089_v13 = vld [vmem:[#allocation7] ss:$8 sps:$4 sm:$0xff]   ;;  %v93_v22 = vpack.c.bf16 %v92_v20, %v92_v20  ;;  %vm201_vm3 = vcmask 138240  }
  0x5e   :  { %127 = vmatpush1.bf16.msra.mxu1 %v121_v10  ;;  %v1090_v15 = vld [vmem:[#allocation7 + $0x14] ss:$8 sps:$4 sm:$0xff]   ;;  %v212_v16 = vand.u32 %v965_v9, %v207_v6  ;;  %464 = vmatprep.subr.bf16.mxu0 %v1087_v12  ;;  %v1092_v17 = vld [vmem:[#allocation7 + $0x10] ss:$8 sps:$4 sm:$0xff]   ;;  %v1093_v18 = vld [vmem:[#allocation7 + $0x24] ss:$8 sps:$4 sm:$0xff]   ;;  %v209_v19 = vand.u32 %v964_v14, %v207_v6 }
  0x5f   :  { %214 = vmatprep.subr.bf16.mxu1 %v1085_v8  ;;  %465 = vmatpush1.bf16.msra.mxu0 %v1089_v13  ;;  %v1095_v21 = vld [vmem:[#allocation7 + $0x20] ss:$8 sps:$4 sm:$0xff]   ;;  %v1096_v23 = vld [vmem:[#allocation7 + $0x34] ss:$8 sps:$4 sm:$0xff]   ;;  %v1098_v24 = vld [vmem:[#allocation7 + $0x30] ss:$8 sps:$4 sm:$0xff]   ;;  %v105_v13 = vlaneseq }
  0x60   :  { %466 = vmatprep.subr.bf16.mxu0 %v1090_v15  ;;  %v1099_v25 = vld [vmem:[#allocation7 + $0x44] ss:$8 sps:$4 sm:$0xff]   ;;  %v1101_v26 = vld [vmem:[#allocation7 + $0x40] ss:$8 sps:$4 sm:$0xff]   ;;  %v1102_v27 = vld [vmem:[#allocation7 + $0x54] ss:$8 sps:$4 sm:$0xff]  }
  0x61   :  { %961 = vmatmul.mubr.msk.bf16.vlgmr.msra.gmra.mrb[0].mxu1 %vm115_vm2, %v95_v11  ;;  %v1104_v28 = vld [vmem:[#allocation7 + $0x50] ss:$8 sps:$4 sm:$0xff]   ;;  %v1105_v29 = vld [vmem:[#allocation7 + $0x64] ss:$8 sps:$4 sm:$0xff]   ;;  %v1107_v30 = vld [vmem:[#allocation7 + $0x60] ss:$8 sps:$4 sm:$0xff]  }
  0x62   :  { %215 = vmatpush1.bf16.msra.mxu1 %v1083_v7  ;;  %246 = vmatprep.mubr.bf16.mxu1 %v1350_v0  ;;  %v1108_v31 = vld [vmem:[#allocation7 + $0x74] ss:$8 sps:$4 sm:$0xff]   ;;  %v1110_v32 = vld [vmem:[#allocation7 + $0x70] ss:$8 sps:$4 sm:$0xff]   ;;  %v1111_v33 = vld [vmem:[#allocation7 + $0x84] ss:$8 sps:$4 sm:$0xff]  }
  0x63   :  { %216 = vmatprep.subr.bf16.mxu1 %v212_v16  ;;  %467 = vmatpush1.bf16.msra.mxu0 %v1092_v17  ;;  %v1113_v34 = vld [vmem:[#allocation7 + $0x80] ss:$8 sps:$4 sm:$0xff]   ;;  %v1114_v35 = vld [vmem:[#allocation7 + $0x94] ss:$8 sps:$4 sm:$0xff]   ;;  %v1116_v36 = vld [vmem:[#allocation7 + $0x90] ss:$8 sps:$4 sm:$0xff]  }
  0x64   :  { %468 = vmatprep.subr.bf16.mxu0 %v1093_v18  ;;  %v1117_v37 = vld [vmem:[#allocation7 + $0xa4] ss:$8 sps:$4 sm:$0xff]   ;;  %v1119_v38 = vld [vmem:[#allocation7 + $0xa0] ss:$8 sps:$4 sm:$0xff]   ;;  %v1120_v39 = vld [vmem:[#allocation7 + $0xb4] ss:$8 sps:$4 sm:$0xff]  }
  0x65   :  { %v1122_v40 = vld [vmem:[#allocation7 + $0xb0] ss:$8 sps:$4 sm:$0xff]   ;;  %v1123_v41 = vld [vmem:[#allocation7 + $0xc4] ss:$8 sps:$4 sm:$0xff]   ;;  %v1125_v42 = vld [vmem:[#allocation7 + $0xc0] ss:$8 sps:$4 sm:$0xff]  }
  0x66   :  { %217 = vmatpush1.bf16.msra.mxu1 %v209_v19  ;;  %v1126_v43 = vld [vmem:[#allocation7 + $0xd4] ss:$8 sps:$4 sm:$0xff]   ;;  %v1128_v44 = vld [vmem:[#allocation7 + $0xd0] ss:$8 sps:$4 sm:$0xff]   ;;  %v1129_v45 = vld [vmem:[#allocation7 + $0xe4] ss:$8 sps:$4 sm:$0xff]  }
  0x67   :  { %469 = vmatpush1.bf16.msra.mxu0 %v1095_v21  ;;  %v1131_v46 = vld [vmem:[#allocation7 + $0xe0] ss:$8 sps:$4 sm:$0xff]   ;;  %v1132_v47 = vld [vmem:[#allocation7 + $0xf4] ss:$8 sps:$4 sm:$0xff]   ;;  %v1134_v48 = vld [vmem:[#allocation7 + $0xf0] ss:$8 sps:$4 sm:$0xff]  }
  0x68   :  { %470 = vmatprep.subr.bf16.mxu0 %v1096_v23  ;;  %v1135_v49 = vld [vmem:[#allocation7 + $0x100] ss:$8 sps:$4 sm:$0xff]   ;;  %v1137_v50 = vld [vmem:[#allocation7 + $0x104] ss:$8 sps:$4 sm:$0xff]   ;;  %v1140_v51 = vld [vmem:[#allocation7 + $0x114] ss:$8 sps:$4 sm:$0xff]  }
  0x69   :  { %966 = vmatmul.mubr.msk.bf16.vlgmr.msra.gmra.mrb[4].mxu1 %vm201_vm3, %v93_v22  ;;  %725 = vmatprep.subr.bf16.mxu1 %v1137_v50  ;;  %v1138_v52 = vld [vmem:[#allocation7 + $0x110] ss:$8 sps:$4 sm:$0xff]   ;;  %v1143_v53 = vld [vmem:[#allocation7 + $0x124] ss:$8 sps:$4 sm:$0xff]   ;;  %v1141_v54 = vld [vmem:[#allocation7 + $0x120] ss:$8 sps:$4 sm:$0xff]  }
  0x6a   :  { %726 = vmatpush1.bf16.msra.mxu1 %v1135_v49  ;;  %v1146_v55 = vld [vmem:[#allocation7 + $0x134] ss:$8 sps:$4 sm:$0xff]   ;;  %v1144_v56 = vld [vmem:[#allocation7 + $0x130] ss:$8 sps:$4 sm:$0xff]   ;;  %v1149_v57 = vld [vmem:[#allocation7 + $0x144] ss:$8 sps:$4 sm:$0xff]  }
  0x6b   :  { %471 = vmatpush1.bf16.msra.mxu0 %v1098_v24  ;;  %727 = vmatprep.subr.bf16.mxu1 %v1140_v51  ;;  %v1147_v58 = vld [vmem:[#allocation7 + $0x140] ss:$8 sps:$4 sm:$0xff]   ;;  %v1152_v59 = vld [vmem:[#allocation7 + $0x154] ss:$8 sps:$4 sm:$0xff]   ;;  %v1150_v60 = vld [vmem:[#allocation7 + $0x150] ss:$8 sps:$4 sm:$0xff]  }
  0x6c   :  { %472 = vmatprep.subr.bf16.mxu0 %v1099_v25  ;;  %v1155_v61 = vld [vmem:[#allocation7 + $0x164] ss:$8 sps:$4 sm:$0xff]   ;;  %v1153_v62 = vld [vmem:[#allocation7 + $0x160] ss:$8 sps:$4 sm:$0xff]   ;;  %v1158_v63 = vld [vmem:[#allocation7 + $0x174] ss:$8 sps:$4 sm:$0xff]  }
  0x6d   :  { %v1156_v0 = vld [vmem:[#allocation7 + $0x170] ss:$8 sps:$4 sm:$0xff]   ;;  %v1161_v1 = vld [vmem:[#allocation7 + $0x184] ss:$8 sps:$4 sm:$0xff]   ;;  %v1159_v2 = vld [vmem:[#allocation7 + $0x180] ss:$8 sps:$4 sm:$0xff]  }
  0x6e   :  { %728 = vmatpush1.bf16.msra.mxu1 %v1138_v52  ;;  %v1164_v3 = vld [vmem:[#allocation7 + $0x194] ss:$8 sps:$4 sm:$0xff]   ;;  %v1162_v4 = vld [vmem:[#allocation7 + $0x190] ss:$8 sps:$4 sm:$0xff]   ;;  %v1167_v5 = vld [vmem:[#allocation7 + $0x1a4] ss:$8 sps:$4 sm:$0xff]  }
  0x6f   :  { %473 = vmatpush1.bf16.msra.mxu0 %v1101_v26  ;;  %729 = vmatprep.subr.bf16.mxu1 %v1143_v53  ;;  %v1165_v6 = vld [vmem:[#allocation7 + $0x1a0] ss:$8 sps:$4 sm:$0xff]   ;;  %v1170_v7 = vld [vmem:[#allocation7 + $0x1b4] ss:$8 sps:$4 sm:$0xff]   ;;  %v1168_v8 = vld [vmem:[#allocation7 + $0x1b0] ss:$8 sps:$4 sm:$0xff]  }
  0x70   :  { %474 = vmatprep.subr.bf16.mxu0 %v1102_v27  ;;  %v1173_v9 = vld [vmem:[#allocation7 + $0x1c4] ss:$8 sps:$4 sm:$0xff]   ;;  %v1171_v10 = vld [vmem:[#allocation7 + $0x1c0] ss:$8 sps:$4 sm:$0xff]   ;;  %v1176_v11 = vld [vmem:[#allocation7 + $0x1d4] ss:$8 sps:$4 sm:$0xff]  }
  0x71   :  { %v1174_v12 = vld [vmem:[#allocation7 + $0x1d0] ss:$8 sps:$4 sm:$0xff]   ;;  %v106_v14 = vshrl.u32 %v105_v13, 7  ;;  %v174_v18 = vld [vmem:[#allocation10] ss:$8 sm:$0x3] }
  0x72   :  { %730 = vmatpush1.bf16.msra.mxu1 %v1141_v54  ;;  %v1194_v49 = vld [vmem:[#allocation8 + $0x28] sm:$0xff]   ;;  %v1196_v13 = vld [vmem:[#allocation8 + $0x30] sm:$0xff]   ;;  %s1351_s1 = smov [#allocation11]  }
  0x73   :  { %475 = vmatpush1.bf16.msra.mxu0 %v1104_v28  ;;  %731 = vmatprep.subr.bf16.mxu1 %v1146_v55  ;;  %v1471_v19 = vsub.s32 0, %v106_v14  ;;  %v1473_v21 = vsub.s32 1, %v106_v14  ;;  %v98_v50 = vld [vmem:[#allocation10 + $0x1] ss:$8 sm:$0x3]  ;;  %v1197_v14 = vld [vmem:[#allocation8 + $0x78] sm:$0xff]  }
  0x74   :  { %476 = vmatprep.subr.bf16.mxu0 %v1105_v29  ;;  %v292_v55 = vld [vmem:[#allocation10 + $0x2] ss:$8 sm:$0x3]  ;;  %s947_s3 = sshll.u32 %s1351_s1, 4  ;;  %s948_s3 = int_to_ptr.vmem [resolvable:$true] %s947_s3 }
  0x75   :  { %v179_v22 = vrot.slane %v174_v18, %v1471_v19  ;;  %v183_v23 = vrot.slane %v174_v18, %v1473_v21  ;;  %v108_v51 = vrot.slane %v98_v50, %v1471_v19  ;;  %v112_v52 = vrot.slane %v98_v50, %v1473_v21  ;;  %s1311_s6 = scalar_lea.vmem %s948_s3, 32  ;;  %p1316_p13 = scmp.lt.s32.totalorder %s948_s3, %s948_s3 }
  0x76   :  { %732 = vmatpush1.bf16.msra.mxu1 %v1144_v56  ;;  %p1312_p12 = scmp.ne.s32.totalorder %s948_s3, %s1311_s6  ;;  %p1317_p0 = scmp.lt.s32.totalorder %s1311_s6, %s1311_s6 }
  0x77   :  { %477 = vmatpush1.bf16.msra.mxu0 %v1107_v30  ;;  %733 = vmatprep.subr.bf16.mxu1 %v1149_v57 }
  0x78   :  { %478 = vmatprep.subr.bf16.mxu0 %v1108_v31  ;;  %p1318_p1 = por %p1317_p0, %p1316_p13 }
  0x7a   :  { %734 = vmatpush1.bf16.msra.mxu1 %v1147_v58  ;;  %v297_v58 = vrot.slane %v292_v55, %v1471_v19  ;;  %p1319_p2 = pnand %p1318_p1, %p1312_p12 }
  0x7b   :  { %479 = vmatpush1.bf16.msra.mxu0 %v1110_v32  ;;  %735 = vmatprep.subr.bf16.mxu1 %v1152_v59  ;;  %v301_v59 = vrot.slane %v292_v55, %v1473_v21 }
  0x7c   :  { %480 = vmatprep.subr.bf16.mxu0 %v1111_v33 }
  0x7e   :  { %736 = vmatpush1.bf16.msra.mxu1 %v1150_v60 }
  0x7f   :  { %481 = vmatpush1.bf16.msra.mxu0 %v1113_v34  ;;  %737 = vmatprep.subr.bf16.mxu1 %v1155_v61  ;;  %v1179_v34 = vld [vmem:[#allocation7 + $0x1e4] ss:$8 sps:$4 sm:$0xff]  }
  0x80   :  { %482 = vmatprep.subr.bf16.mxu0 %v1114_v35  ;;  %v1177_v35 = vld [vmem:[#allocation7 + $0x1e0] ss:$8 sps:$4 sm:$0xff]  }
  0x82   :  { %738 = vmatpush1.bf16.msra.mxu1 %v1153_v62 }
  0x83   :  { %483 = vmatpush1.bf16.msra.mxu0 %v1116_v36  ;;  %739 = vmatprep.subr.bf16.mxu1 %v1158_v63  ;;  %v1182_v36 = vld [vmem:[#allocation7 + $0x1f4] ss:$8 sps:$4 sm:$0xff]  }
  0x84   :  { %484 = vmatprep.subr.bf16.mxu0 %v1117_v37  ;;  %v1180_v37 = vld [vmem:[#allocation7 + $0x1f0] ss:$8 sps:$4 sm:$0xff]  }
  0x86   :  { %740 = vmatpush1.bf16.msra.mxu1 %v1156_v0 }
  0x87   :  { %485 = vmatpush1.bf16.msra.mxu0 %v1119_v38  ;;  %741 = vmatprep.subr.bf16.mxu1 %v1161_v1  ;;  %v1183_v38 = vld [vmem:[#allocation8 + $0x40] sm:$0xff]  }
  0x88   :  { %486 = vmatprep.subr.bf16.mxu0 %v1120_v39  ;;  %v1184_v39 = vld [vmem:[#allocation8] sm:$0xff]  }
  0x8a   :  { %742 = vmatpush1.bf16.msra.mxu1 %v1159_v2 }
  0x8b   :  { %487 = vmatpush1.bf16.msra.mxu0 %v1122_v40  ;;  %743 = vmatprep.subr.bf16.mxu1 %v1164_v3  ;;  %v1185_v40 = vld [vmem:[#allocation8 + $0x48] sm:$0xff]  }
  0x8c   :  { %488 = vmatprep.subr.bf16.mxu0 %v1123_v41  ;;  %v1186_v41 = vld [vmem:[#allocation8 + $0x8] sm:$0xff]  }
  0x8e   :  { %744 = vmatpush1.bf16.msra.mxu1 %v1162_v4 }
  0x8f   :  { %489 = vmatpush1.bf16.msra.mxu0 %v1125_v42  ;;  %745 = vmatprep.subr.bf16.mxu1 %v1167_v5  ;;  %v1187_v42 = vld [vmem:[#allocation8 + $0x50] sm:$0xff]  }
  0x90   :  { %490 = vmatprep.subr.bf16.mxu0 %v1126_v43  ;;  %v1188_v43 = vld [vmem:[#allocation8 + $0x10] sm:$0xff]  }
  0x92   :  { %746 = vmatpush1.bf16.msra.mxu1 %v1165_v6 }
  0x93   :  { %491 = vmatpush1.bf16.msra.mxu0 %v1128_v44  ;;  %747 = vmatprep.subr.bf16.mxu1 %v1170_v7  ;;  %v1189_v44 = vld [vmem:[#allocation8 + $0x58] sm:$0xff]  }
  0x94   :  { %492 = vmatprep.subr.bf16.mxu0 %v1129_v45  ;;  %v1190_v45 = vld [vmem:[#allocation8 + $0x18] sm:$0xff]  }
  0x96   :  { %748 = vmatpush1.bf16.msra.mxu1 %v1168_v8 }
  0x97   :  { %493 = vmatpush1.bf16.msra.mxu0 %v1131_v46  ;;  %749 = vmatprep.subr.bf16.mxu1 %v1173_v9  ;;  %v1191_v46 = vld [vmem:[#allocation8 + $0x60] sm:$0xff]  }
  0x98   :  { %494 = vmatprep.subr.bf16.mxu0 %v1132_v47  ;;  %v1192_v47 = vld [vmem:[#allocation8 + $0x20] sm:$0xff]  }
  0x9a   :  { %750 = vmatpush1.bf16.msra.mxu1 %v1171_v10 }
  0x9b   :  { %495 = vmatpush1.bf16.msra.mxu0 %v1134_v48  ;;  %751 = vmatprep.subr.bf16.mxu1 %v1176_v11  ;;  %v1193_v48 = vld [vmem:[#allocation8 + $0x68] sm:$0xff]  }
  0x9c   :  { %1047 = vmatprep.subr.bf16.mxu0 %v1183_v38 }
  0x9e   :  { %752 = vmatpush1.bf16.msra.mxu1 %v1174_v12  ;;  %v1195_v12 = vld [vmem:[#allocation8 + $0x70] sm:$0xff]  }
  0x9f   :  { %753 = vmatprep.subr.bf16.mxu1 %v1179_v34 }
  0xa2   :  { %754 = vmatpush1.bf16.msra.mxu1 %v1177_v35 }
  0xa3   :  { %755 = vmatprep.subr.bf16.mxu1 %v1182_v36 }
  0xa6   :  { %756 = vmatpush1.bf16.msra.mxu1 %v1180_v37 }
 0x134   :  { %v160_v15 = vpop.f32.mrb[0].mxu1 }
 0x135   :  { %v162_v16 = vpop.f32.mrb[1].mxu1  ;;  %v161_v53 = vadd.f32 %v160_v15, %v108_v51  ;;  %v1198_v15 = vld [vmem:[#allocation8 + $0x38] sm:$0xff]  }
 0x136   :  { %v164_v17 = vpop.f32.mrb[2].mxu1  ;;  %v163_v54 = vadd.f32 %v162_v16, %v112_v52  ;;  %v553_v16 = vld [vmem:[#allocation10 + $0x3] ss:$8 sm:$0x3] }
 0x137   :  { %v165_v20 = vpop.f32.mrb[3].mxu1  ;;  %v167_v56 = vmul.f32 0.01, %v161_v53  ;;  %v558_v17 = vrot.slane %v553_v16, %v1471_v19  ;;  %v562_v18 = vrot.slane %v553_v16, %v1473_v21 }
 0x138   :  { %v168_v57 = vmul.f32 0.01, %v163_v54 }
 0x139   :  { %v169_v60 = vmax.f32 %v161_v53, %v167_v56 }
 0x13a   :  { %v170_v61 = vmax.f32 %v163_v54, %v168_v57 }
 0x13b   :  { %v510_v3 = vrot.slane %v169_v60, %v1471_v19 }
 0x13c   :  { %v248_v24 = vpop.f32.mrb[4].mxu1  ;;  %v514_v6 = vrot.slane %v170_v61, %v1471_v19 }
 0x13d   :  { %v249_v25 = vadd.f32 %v248_v24, %v179_v22  ;;  %v250_v26 = vpop.f32.mrb[5].mxu1 }
 0x13e   :  { %v251_v27 = vadd.f32 %v250_v26, %v183_v23  ;;  %v252_v28 = vpop.f32.mrb[6].mxu1 }
 0x13f   :  { %v255_v29 = vmax.f32 %v249_v25, 0.0  ;;  %v253_v30 = vpop.f32.mrb[7].mxu1 }
 0x140   :  { %v256_v31 = vmax.f32 %v251_v27, 0.0 }
 0x141   :  { %v257_v33 = vpack.c.bf16 %v255_v29, %v255_v29 }
 0x142   :  { %v258_v32 = vpack.c.bf16 %v256_v31, %v256_v31 }
 0x144   :  { %496 = vmatprep.mubr.bf16.mxu0 %v258_v32  ;;  %v802_v32 = vld [vmem:[#allocation10 + $0x4] ss:$0 sm:$0xff] }
 0x145   :  { %497 = vmatmul.mubr.bf16.vlgmr.msra.gmra.mrb[0].mxu0 %v257_v33 }
 0x146   :  { %1048 = vmatpush3.bf16.msra.mxu0 %v1184_v39 }
 0x147   :  { %1049 = vmatprep.subr.bf16.mxu0 %v1185_v40 }
 0x14a   :  { %1050 = vmatpush3.bf16.msra.mxu0 %v1186_v41 }
 0x14b   :  { %1051 = vmatprep.subr.bf16.mxu0 %v1187_v42 }
 0x14e   :  { %1052 = vmatpush3.bf16.msra.mxu0 %v1188_v43 }
 0x14f   :  { %1053 = vmatprep.subr.bf16.mxu0 %v1189_v44 }
 0x152   :  { %1054 = vmatpush3.bf16.msra.mxu0 %v1190_v45 }
 0x153   :  { %1055 = vmatprep.subr.bf16.mxu0 %v1191_v46 }
 0x156   :  { %1056 = vmatpush3.bf16.msra.mxu0 %v1192_v47 }
 0x157   :  { %1057 = vmatprep.subr.bf16.mxu0 %v1193_v48 }
 0x15a   :  { %1058 = vmatpush3.bf16.msra.mxu0 %v1194_v49 }
 0x15b   :  { %1059 = vmatprep.subr.bf16.mxu0 %v1195_v12 }
 0x15e   :  { %1060 = vmatpush3.bf16.msra.mxu0 %v1196_v13 }
 0x15f   :  { %1061 = vmatprep.subr.bf16.mxu0 %v1197_v14 }
 0x162   :  { %1062 = vmatpush3.bf16.msra.mxu0 %v1198_v15 }
 0x218   :  { %v498_v62 = vpop.f32.mrb[0].mxu0 }
 0x219   :  { %v499_v63 = vadd.f32 %v498_v62, %v297_v58  ;;  %v500_v0 = vpop.f32.mrb[1].mxu0 }
 0x21a   :  { %v501_v1 = vadd.f32 %v500_v0, %v301_v59  ;;  %v502_v2 = vpop.f32.mrb[2].mxu0 }
 0x21b   :  { %v505_v4 = vmax.f32 %v499_v63, 0.0  ;;  %v503_v5 = vpop.f32.mrb[3].mxu0 }
 0x21c   :  { %v506_v7 = vmax.f32 %v501_v1, 0.0 }
 0x21d   :  { %v515_v8 = vmul.f32 %v510_v3, %v505_v4 }
 0x21e   :  { %v516_v9 = vmul.f32 %v514_v6, %v506_v7 }
 0x21f   :  { %v517_v11 = vpack.c.bf16 %v515_v8, %v515_v8 }
 0x220   :  { %v518_v10 = vpack.c.bf16 %v516_v9, %v516_v9 }
 0x222   :  { %757 = vmatprep.mubr.bf16.mxu1 %v518_v10 }
 0x223   :  { %758 = vmatmul.mubr.bf16.vlgmr.msra.gmra.mrb[8].mxu1 %v517_v11 }
 0x2f6   :  { %v759_v20 = vpop.f32.mrb[8].mxu1 }
 0x2f7   :  { %v760_v22 = vadd.f32 %v759_v20, %v558_v17  ;;  %v761_v23 = vpop.f32.mrb[9].mxu1 }
 0x2f8   :  { %v762_v24 = vadd.f32 %v761_v23, %v562_v18  ;;  %v763_v25 = vpop.f32.mrb[10].mxu1 }
 0x2f9   :  { %v766_v26 = vmax.f32 %v760_v22, 0.0  ;;  %v764_v27 = vpop.f32.mrb[11].mxu1 }
 0x2fa   :  { %v767_v28 = vmax.f32 %v762_v24, 0.0 }
 0x2fb   :  { %v768_v30 = vpack.c.bf16 %v766_v26, %v766_v26 }
 0x2fc   :  { %v769_v29 = vpack.c.bf16 %v767_v28, %v767_v28 }
 0x2fe   :  { %931 = vmatprep.mubr.bf16.mxu0 %v769_v29 }
 0x2ff   :  { %932 = vmatmul.mubr.bf16.vlgmr.msra.gmra.mrb[4].mxu0 %v768_v30 }
 0x3d2   :  { %v1063_v31 = vpop.f32.mrb[4].mxu0 }
 0x3d3   :  { %v1064_v33 = vpop.f32.mrb[5].mxu0 }
 0x3d4   :  { %v1065_v34 = vadd.f32 %v1064_v33, %v1063_v31  ;;  %v1066_v35 = vpop.f32.mrb[6].mxu0 }
 0x3d5   :  { %v1067_v19 = vpop.f32.mrb[7].mxu0 }
 0x3d6   :  { %v934_v36 = vadd.f32 %v1065_v34, %v802_v32 }
 0x3d8   :  { %1199 = vtanh.f32 %v934_v36 }
 0x3e2   :  { %v1200_v21 = vpop.eup %1199 }
 0x3e3   :  { %940 = vst [vmem:[#allocation11] sm:$0x3] %v1200_v21 }
 0x3e4   :  { %1322 = shalt.err (!%p1319_p2)
}
 0x3e5   :  { %s1323_s21 = scalar_lea.hbm %s1504_s7, 32 }
 0x3e6   :  { %p1324_p3 = scmp.ne.s32.totalorder %s1504_s7, %s1323_s21  ;;  %p1327_p4 = scmp.lt.u32.totalorder %s1323_s21, %s1504_s7 }
 0x3e8   :  { %p1329_p5 = pnand %p1327_p4, %p1324_p3 }
 0x3ea   :  { %1332 = shalt.err (!%p1329_p5)
}
 0x3eb   :  { %950 = dma.vmem_to_hbm [thread:$0]  %s948_s3, 32, %s1504_s7, [#allocation4]  }
 0x3ec   :  { %1339 = dma.done.wait [#allocation4], 32  }
 0x3ed   :  { %1340 = vsyncadd [#allocation4], 4294967264 }
 0x3ee   :  { %954 = vsyncpa [#allocation3], 1 }
 0x3ef   :  { %955 = vsyncpa [#allocation6], 1 }
 0x3f0   :  { %956 = vsyncpa [#allocation9], 1 }
 0x3f1   :  { %957 = vsyncpa [#allocation4], 1 }

</bundles_post_ra>
